<compile_context>
chip_gen: v7x
topology: tpu7x:2x2x1
jax: 0.10.0
libtpu: 0.0.40
codegen_flags: <defaults>
</compile_context>

<pallas_src>
import functools
import math

import jax
import jax.numpy as jnp
import numpy as np
from jax import lax
from jax.experimental import pallas as pl
from jax.experimental.pallas import tpu as pltpu


# ---------------------------------------------------------------------------
# Kernels
# ---------------------------------------------------------------------------
def _dma_kernel(x_hbm, o_ref, x_vmem, in_sems, *,
                n_blk, c_blk, real_cblocks, stride, Wo):
    """Optimized kernel: strided-H manual DMA, double-buffered, W-subsample on load.

    x_hbm : (N, C_in, Ho, stride, Wp)  raw HBM ref (memory_space=pl.ANY)
    o_ref : (n_blk, c_blk, Ho, Wo)     VMEM output block (auto-pipelined writeback)
    x_vmem: (2, n_blk, c_blk, Ho, Wp)  double-buffered input scratch
    in_sems: (2,)                      DMA completion semaphores
    """
    nb = pl.program_id(0)
    cb = pl.program_id(1)

    def fetch(cb_idx, slot):
        n0 = pl.multiple_of(nb * n_blk, n_blk)
        c0 = pl.multiple_of(cb_idx * c_blk, c_blk)
        # Indexing the `stride` axis at 0 makes this one DMA copy only the Ho kept rows
        # (stride x fewer HBM read bytes); the minor (W) axis stays fully contiguous.
        pltpu.make_async_copy(
            x_hbm.at[pl.ds(n0, n_blk), pl.ds(c0, c_blk), :, 0, :],
            x_vmem.at[slot],
            in_sems.at[slot],
        ).start()

    def wait(slot):
        pltpu.make_async_copy(
            x_hbm.at[pl.ds(0, n_blk), pl.ds(0, c_blk), :, 0, :],
            x_vmem.at[slot],
            in_sems.at[slot],
        ).wait()

    @pl.when(cb < real_cblocks)
    def _real_channels():
        slot = cb % 2

        # Prime the pipe at the first real-channel step of this batch block.
        @pl.when(cb == 0)
        def _prime():
            fetch(0, 0)

        # Double buffering: start the fetch for the next real-channel block before
        # waiting on the current one, so its DMA overlaps this step's work + writeback.
        @pl.when(cb + 1 < real_cblocks)
        def _prefetch():
            fetch(cb + 1, 1 - slot)

        wait(slot)

        if stride == 1:
            o_ref[...] = x_vmem[slot]
        else:
            # W-subsample == x[..., ::stride]: strided load along the lane axis.  Kept
            # in-kernel (VPU/XLU work hides under the DMA) instead of in the DMA, where an
            # element-strided minor axis would wreck transfer efficiency.
            o_ref[...] = x_vmem[slot, :, :, :, pl.ds(0, Wo, stride=stride)]

    @pl.when(cb >= real_cblocks)
    def _pad_channels():
        # Zero-padded channels: pure wide store, no input DMA at all.
        o_ref[...] = jnp.zeros_like(o_ref)


def _portable_kernel(x_ref, o_ref, *, n_blk, c_blk, real_cblocks,
                     stride, Hp, Wp, Ho, Wo):
    """Fallback kernel built only from universally-lowerable ops.

    Input is BlockSpec-pipelined at full H (index_map clamps pad-channel steps onto the
    last real block so consecutive pad steps trigger no new input DMA).  The H/W subsample
    is an exact per-(n, c)-plane select-and-reduce on the VPU (multiply by a 0/1 selector,
    sum out the dropped axis), so results are bit-identical to a gather.
    """
    cb = pl.program_id(1)

    @pl.when(cb < real_cblocks)
    def _real_channels():
        f32 = jnp.float32
        # sel_h[k, x] = 1 iff x == k*stride  (Ho, Hp);  sel_w[x, k] = 1 iff x == k*stride (Wp, Wo)
        sel_h = (stride * lax.broadcasted_iota(jnp.int32, (Ho, Hp), 0)
                 == lax.broadcasted_iota(jnp.int32, (Ho, Hp), 1)).astype(f32)
        sel_w = (lax.broadcasted_iota(jnp.int32, (Wp, Wo), 0)
                 == stride * lax.broadcasted_iota(jnp.int32, (Wp, Wo), 1)).astype(f32)
        for n in range(n_blk):          # small, static trip counts (fallback path only)
            for c in range(c_blk):
                plane = x_ref[n, c].astype(f32)                                   # (Hp, Wp)
                rows = jnp.sum(sel_h[:, :, None] * plane[None, :, :], axis=1)     # (Ho, Wp)
                kept = jnp.sum(rows[:, :, None] * sel_w[None, :, :], axis=1)      # (Ho, Wo)
                o_ref[n, c] = kept.astype(o_ref.dtype)

    @pl.when(cb >= real_cblocks)
    def _pad_channels():
        o_ref[...] = jnp.zeros_like(o_ref)


# ---------------------------------------------------------------------------
# Planning helpers
# ---------------------------------------------------------------------------
def _round_up(x, m):
    return -(-x // m) * m


def _padded_tile_bytes(rows, cols, itemsize):
    # VMEM pads the last two dims to (8, 128) register tiles (f32 tiling; slight
    # under-estimate for sub-32-bit dtypes, fine for budgeting).
    return _round_up(max(rows, 1), 8) * _round_up(max(cols, 1), 128) * itemsize


def _largest_divisor(total, ok):
    best = 1
    for d in range(1, total + 1):
        if total % d == 0 and ok(d):
            best = d
    return best


# ---------------------------------------------------------------------------
# Wrapper
# ---------------------------------------------------------------------------
def identity_padding(x, *, out_channels, stride):
    """(N, C_in, H, W) -> (N, C_out, Ho, Wo): zero-pad trailing channels, then keep every
    `stride`-th row/column (== nn.MaxPool2d(1, stride), floor mode)."""
    N, C_in, H, W = x.shape
    assert out_channels >= C_in, "IdentityPadding only adds channels"
    itemsize = jnp.dtype(x.dtype).itemsize

    # MaxPool2d(1, stride) floor-mode output sizes.  Pad H/W up to a stride multiple so H
    # factors exactly as (Ho, stride); padded rows/cols are never selected (kept indices
    # are k*stride <= H-1), so zero padding is semantically a no-op.
    Ho = (H - 1) // stride + 1
    Wo = (W - 1) // stride + 1
    Hp, Wp = Ho * stride, Wo * stride
    if (Hp, Wp) != (H, W):
        x = jnp.pad(x, ((0, 0), (0, 0), (0, Hp - H), (0, Wp - W)))

    # ---- Generation-aware block sizing ------------------------------------------------
    try:
        vmem_cap = int(pltpu.get_tpu_info().vmem_capacity_bytes)
    except Exception:
        vmem_cap = 64 << 20            # v7x per-TensorCore VMEM: safe floor for all gens
    # MiB-scale input slabs amortise the ~0.35us/grid-step overhead; keep 2x input slots +
    # 2x output buffers + headroom comfortably under VMEM on every generation (v5e/v6e:
    # 128 MiB, v7x: 64 MiB), including the full-H fallback path.
    slab_budget = max(1 << 20, min(16 << 20, vmem_cap // (4 * (stride + 1))))

    in_plane = _padded_tile_bytes(Ho, Wp, itemsize)     # one (Ho, Wp) plane in VMEM
    g = math.gcd(C_in, out_channels)
    # c_blk divides gcd(C_in, C_out): no block straddles the real/pad channel boundary and
    # the channel grid tiles C_out exactly.  Prefer >= 2 real blocks per batch row so the
    # input double-buffering has a next block to overlap with.
    c_blk = _largest_divisor(
        g, lambda d: d * in_plane <= slab_budget and (C_in // d >= 2 or C_in == 1))
    # n_blk divides N; keep >= 2 batch blocks so megacore can shard the (uniform-cost)
    # batch axis across both TensorCores on v7x.
    n_blk = _largest_divisor(
        N, lambda d: d * c_blk * in_plane <= slab_budget and (N // d >= 2 or N == 1))

    assert C_in % c_blk == 0 and out_channels % c_blk == 0 and N % n_blk == 0, (
        "channel block must divide both C_in and C_out; batch block must divide N")
    real_cblocks = C_in // c_blk
    grid = (N // n_blk, out_channels // c_blk)

    in_slab = n_blk * c_blk * in_plane
    out_buf = n_blk * c_blk * _padded_tile_bytes(Ho, Wo, itemsize)
    # Cover the larger (full-H fallback) residency so one limit serves both paths.
    resident = 2 * stride * in_slab + 2 * out_buf + (8 << 20)
    vmem_limit = int(min(max(resident, 32 << 20), int(vmem_cap * 0.85)))

    out_shape = jax.ShapeDtypeStruct((N, out_channels, Ho, Wo), x.dtype)
    out_spec = pl.BlockSpec((n_blk, c_blk, Ho, Wo), lambda nb, cb: (nb, cb, 0, 0))
    write_bytes = N * out_channels * Ho * Wo * itemsize
    compiler_params = pltpu.CompilerParams(
        # Batch axis is megacore-sharded (uniform cost per step); the channel axis mixes
        # DMA-heavy real blocks with zero-only pad blocks and carries the manual DMA
        # schedule, so it stays "arbitrary" (and on one core).
        dimension_semantics=("parallel", "arbitrary"),
        vmem_limit_bytes=vmem_limit,
    )

    def run_optimized():
        # Free, contiguous view: H = Ho * stride, exposed so the DMA can skip dropped rows.
        x5 = x.reshape(N, C_in, Ho, stride, Wp)
        kernel = functools.partial(
            _dma_kernel, n_blk=n_blk, c_blk=c_blk, real_cblocks=real_cblocks,
            stride=stride, Wo=Wo)
        read_bytes = N * C_in * Ho * Wp * itemsize          # strided-H fetch
        return pl.pallas_call(
            kernel,
            out_shape=out_shape,
            grid_spec=pltpu.PrefetchScalarGridSpec(
                num_scalar_prefetch=0,
                grid=grid,
                # Raw HBM ref: pad-channel grid steps never fetch (or buffer) input data.
                in_specs=[pl.BlockSpec(memory_space=pl.ANY)],
                out_specs=out_spec,
                scratch_shapes=[
                    pltpu.VMEM((2, n_blk, c_blk, Ho, Wp), x.dtype),   # double buffer
                    pltpu.SemaphoreType.DMA((2,)),
                ]),
            compiler_params=compiler_params,
            cost_estimate=pl.CostEstimate(
                flops=0, transcendentals=0, bytes_accessed=read_bytes + write_bytes),
        )(x5)

    def run_portable():
        kernel = functools.partial(
            _portable_kernel, n_blk=n_blk, c_blk=c_blk, real_cblocks=real_cblocks,
            stride=stride, Hp=Hp, Wp=Wp, Ho=Ho, Wo=Wo)
        read_bytes = N * C_in * Hp * Wp * itemsize          # full-H fetch
        last_real = real_cblocks - 1
        in_spec = pl.BlockSpec(
            (n_blk, c_blk, Hp, Wp),
            # Clamp pad-channel steps onto the last real block: the channel axis is the
            # innermost grid dim, so the block index is unchanged across consecutive pad
            # steps and Pallas skips the redundant input DMA.
            lambda nb, cb: (nb, jnp.minimum(cb, last_real), 0, 0))
        return pl.pallas_call(
            kernel,
            out_shape=out_shape,
            grid_spec=pltpu.PrefetchScalarGridSpec(
                num_scalar_prefetch=0,
                grid=grid,
                in_specs=[in_spec],
                out_specs=out_spec),
            compiler_params=compiler_params,
            cost_estimate=pl.CostEstimate(
                flops=0, transcendentals=0, bytes_accessed=read_bytes + write_bytes),
        )(x)

    try:
        return run_optimized()
    except Exception:
        # The optimized path relies on a squeeze-indexed HBM DMA window and a lane-strided
        # VMEM load whose Mosaic support can vary across jaxlib releases; degrade
        # gracefully to the formulation built only from universally supported ops.
        return run_portable()


def identity_padding_ref(x, *, out_channels, stride):
    """Pure-JAX reference mirroring the PyTorch module."""
    N, C_in, H, W = x.shape
    out = jnp.pad(x, ((0, 0), (0, out_channels - C_in), (0, 0), (0, 0)))
    return out[:, :, ::stride, ::stride]


if __name__ == "__main__":
    # Module config: IdentityPadding(in_channels=4, out_channels=8, stride=2)
    in_channels, out_channels, stride = 4, 8, 2
    N, H, W = 2, 16, 16

    key = jax.random.PRNGKey(0)
    x = jax.random.normal(key, (N, in_channels, H, W), dtype=jnp.float32)

    out = identity_padding(x, out_channels=out_channels, stride=stride)
    out = jax.block_until_ready(out)

    ref = identity_padding_ref(x, out_channels=out_channels, stride=stride)
    np.testing.assert_allclose(np.asarray(out), np.asarray(ref), rtol=0, atol=0)

    print("KERNEL_OK")
</pallas_src>

<mosaic_0001>
module attributes {stable_mosaic.version = 11 : i64} {
  func.func @_dma_kernel(%arg0: i32, %arg1: i32, %arg2: memref<2x4x8x2x16xf32, #tpu.memory_space<any>>, %arg3: memref<1x2x8x8xf32, #tpu.memory_space<vmem>>, %arg4: memref<2x1x2x8x16xf32, #tpu.memory_space<vmem>>, %arg5: memref<2x!tpu.dma_semaphore, #tpu.memory_space<semaphore_mem>>) attributes {dimension_semantics = [#tpu.dimension_semantics<parallel>, #tpu.dimension_semantics<arbitrary>], iteration_bounds = array<i64: 2, 4>, scalar_prefetch = 0 : i64, scratch_operands = 2 : i64, tpu.core_type = #tpu.core_type<tc>, window_params = [{}, {transform_indices = @transform_1, window_bounds = array<i64: 1, 2, 8, 8>}]} {
    %c2_i32 = arith.constant 2 : i32
    %0 = arith.cmpi slt, %arg1, %c2_i32 : i32
    %1 = arith.extui %0 : i1 to i32
    %c0_i32 = arith.constant 0 : i32
    %2 = arith.cmpi ne, %1, %c0_i32 : i32
    scf.if %2 {
      %c2_i32_2 = arith.constant 2 : i32
      %c0_i32_3 = arith.constant 0 : i32
      %6 = arith.cmpi eq, %c2_i32_2, %c0_i32_3 : i32
      %c1_i32 = arith.constant 1 : i32
      %7 = arith.select %6, %c1_i32, %c2_i32_2 : i32
      %8 = arith.remsi %arg1, %7 : i32
      %c0_i32_4 = arith.constant 0 : i32
      %9 = arith.cmpi ne, %8, %c0_i32_4 : i32
      %c0_i32_5 = arith.constant 0 : i32
      %10 = arith.cmpi slt, %8, %c0_i32_5 : i32
      %c0_i32_6 = arith.constant 0 : i32
      %11 = arith.cmpi slt, %7, %c0_i32_6 : i32
      %12 = arith.xori %10, %11 : i1
      %13 = arith.andi %12, %9 : i1
      %14 = arith.addi %8, %7 : i32
      %15 = arith.select %13, %14, %8 : i32
      %c0_i32_7 = arith.constant 0 : i32
      %16 = arith.cmpi eq, %arg1, %c0_i32_7 : i32
      %17 = arith.extui %16 : i1 to i32
      %c0_i32_8 = arith.constant 0 : i32
      %18 = arith.cmpi ne, %17, %c0_i32_8 : i32
      scf.if %18 {
        %c1_i32_28 = arith.constant 1 : i32
        %33 = arith.muli %arg0, %c1_i32_28 : i32
        %34 = tpu.assume_multiple %33, 1 : i32
        %c0_i32_29 = arith.constant 0 : i32
        %35 = tpu.assume_multiple %c0_i32_29, 2 : i32
        %c0_i32_30 = arith.constant 0 : i32
        %c0_i32_31 = arith.constant 0 : i32
        %c0_i32_32 = arith.constant 0 : i32
        %c0_i32_33 = arith.constant 0 : i32
        %c0_i32_34 = arith.constant 0 : i32
        %36 = tpu.memref_slice %arg2[%34, %35, %c0_i32_33, %c0_i32_30, %c0_i32_34] : memref<2x4x8x2x16xf32, #tpu.memory_space<any>> -> memref<1x2x8x1x16xf32, #tpu.memory_space<any>>
        %37 = tpu.memref_squeeze %36 : memref<1x2x8x1x16xf32, #tpu.memory_space<any>> -> memref<1x2x8x16xf32, #tpu.memory_space<any>>
        %c0_i32_35 = arith.constant 0 : i32
        %c0_i32_36 = arith.constant 0 : i32
        %c0_i32_37 = arith.constant 0 : i32
        %c0_i32_38 = arith.constant 0 : i32
        %38 = tpu.memref_slice %arg4[%c0_i32_31, %c0_i32_35, %c0_i32_36, %c0_i32_37, %c0_i32_38] : memref<2x1x2x8x16xf32, #tpu.memory_space<vmem>> -> memref<1x1x2x8x16xf32, #tpu.memory_space<vmem>>
        %39 = tpu.memref_squeeze %38 : memref<1x1x2x8x16xf32, #tpu.memory_space<vmem>> -> memref<1x2x8x16xf32, #tpu.memory_space<vmem>>
        %40 = tpu.memref_slice %arg5[%c0_i32_32] : memref<2x!tpu.dma_semaphore, #tpu.memory_space<semaphore_mem>> -> memref<1x!tpu.dma_semaphore, #tpu.memory_space<semaphore_mem>>
        %41 = tpu.memref_squeeze %40 : memref<1x!tpu.dma_semaphore, #tpu.memory_space<semaphore_mem>> -> memref<!tpu.dma_semaphore, #tpu.memory_space<semaphore_mem>>
        tpu.enqueue_dma source(%37 : memref<1x2x8x16xf32, #tpu.memory_space<any>>) target(%39 : memref<1x2x8x16xf32, #tpu.memory_space<vmem>>) target_semaphore(%41 : memref<!tpu.dma_semaphore, #tpu.memory_space<semaphore_mem>>)
      } else {
      }
      %c1_i32_9 = arith.constant 1 : i32
      %19 = arith.addi %arg1, %c1_i32_9 : i32
      %c2_i32_10 = arith.constant 2 : i32
      %20 = arith.cmpi slt, %19, %c2_i32_10 : i32
      %21 = arith.extui %20 : i1 to i32
      %c0_i32_11 = arith.constant 0 : i32
      %22 = arith.cmpi ne, %21, %c0_i32_11 : i32
      scf.if %22 {
        %c1_i32_28 = arith.constant 1 : i32
        %33 = arith.addi %arg1, %c1_i32_28 : i32
        %c1_i32_29 = arith.constant 1 : i32
        %34 = arith.subi %c1_i32_29, %15 : i32
        %c1_i32_30 = arith.constant 1 : i32
        %35 = arith.muli %arg0, %c1_i32_30 : i32
        %36 = tpu.assume_multiple %35, 1 : i32
        %c2_i32_31 = arith.constant 2 : i32
        %37 = arith.muli %33, %c2_i32_31 : i32
        %38 = tpu.assume_multiple %37, 2 : i32
        %c0_i32_32 = arith.constant 0 : i32
        %c0_i32_33 = arith.constant 0 : i32
        %c0_i32_34 = arith.constant 0 : i32
        %39 = tpu.memref_slice %arg2[%36, %38, %c0_i32_33, %c0_i32_32, %c0_i32_34] : memref<2x4x8x2x16xf32, #tpu.memory_space<any>> -> memref<1x2x8x1x16xf32, #tpu.memory_space<any>>
        %40 = tpu.memref_squeeze %39 : memref<1x2x8x1x16xf32, #tpu.memory_space<any>> -> memref<1x2x8x16xf32, #tpu.memory_space<any>>
        %c0_i32_35 = arith.constant 0 : i32
        %c0_i32_36 = arith.constant 0 : i32
        %c0_i32_37 = arith.constant 0 : i32
        %c0_i32_38 = arith.constant 0 : i32
        %41 = tpu.memref_slice %arg4[%34, %c0_i32_35, %c0_i32_36, %c0_i32_37, %c0_i32_38] : memref<2x1x2x8x16xf32, #tpu.memory_space<vmem>> -> memref<1x1x2x8x16xf32, #tpu.memory_space<vmem>>
        %42 = tpu.memref_squeeze %41 : memref<1x1x2x8x16xf32, #tpu.memory_space<vmem>> -> memref<1x2x8x16xf32, #tpu.memory_space<vmem>>
        %43 = tpu.memref_slice %arg5[%34] : memref<2x!tpu.dma_semaphore, #tpu.memory_space<semaphore_mem>> -> memref<1x!tpu.dma_semaphore, #tpu.memory_space<semaphore_mem>>
        %44 = tpu.memref_squeeze %43 : memref<1x!tpu.dma_semaphore, #tpu.memory_space<semaphore_mem>> -> memref<!tpu.dma_semaphore, #tpu.memory_space<semaphore_mem>>
        tpu.enqueue_dma source(%40 : memref<1x2x8x16xf32, #tpu.memory_space<any>>) target(%42 : memref<1x2x8x16xf32, #tpu.memory_space<vmem>>) target_semaphore(%44 : memref<!tpu.dma_semaphore, #tpu.memory_space<semaphore_mem>>)
      } else {
      }
      %c0_i32_12 = arith.constant 0 : i32
      %c0_i32_13 = arith.constant 0 : i32
      %c0_i32_14 = arith.constant 0 : i32
      %c0_i32_15 = arith.constant 0 : i32
      %c0_i32_16 = arith.constant 0 : i32
      %23 = tpu.memref_slice %arg2[%c0_i32_13, %c0_i32_14, %c0_i32_15, %c0_i32_12, %c0_i32_16] : memref<2x4x8x2x16xf32, #tpu.memory_space<any>> -> memref<1x2x8x1x16xf32, #tpu.memory_space<any>>
      %24 = tpu.memref_squeeze %23 : memref<1x2x8x1x16xf32, #tpu.memory_space<any>> -> memref<1x2x8x16xf32, #tpu.memory_space<any>>
      %c0_i32_17 = arith.constant 0 : i32
      %c0_i32_18 = arith.constant 0 : i32
      %c0_i32_19 = arith.constant 0 : i32
      %c0_i32_20 = arith.constant 0 : i32
      %25 = tpu.memref_slice %arg4[%15, %c0_i32_17, %c0_i32_18, %c0_i32_19, %c0_i32_20] : memref<2x1x2x8x16xf32, #tpu.memory_space<vmem>> -> memref<1x1x2x8x16xf32, #tpu.memory_space<vmem>>
      %26 = tpu.memref_squeeze %25 : memref<1x1x2x8x16xf32, #tpu.memory_space<vmem>> -> memref<1x2x8x16xf32, #tpu.memory_space<vmem>>
      %27 = tpu.memref_slice %arg5[%15] : memref<2x!tpu.dma_semaphore, #tpu.memory_space<semaphore_mem>> -> memref<1x!tpu.dma_semaphore, #tpu.memory_space<semaphore_mem>>
      %28 = tpu.memref_squeeze %27 : memref<1x!tpu.dma_semaphore, #tpu.memory_space<semaphore_mem>> -> memref<!tpu.dma_semaphore, #tpu.memory_space<semaphore_mem>>
      tpu.wait_dma2 semaphore(%28 : memref<!tpu.dma_semaphore, #tpu.memory_space<semaphore_mem>>) src(%24 : memref<1x2x8x16xf32, #tpu.memory_space<any>>) dst(%26 : memref<1x2x8x16xf32, #tpu.memory_space<vmem>>)
      %29 = arith.index_cast %15 : i32 to index
      %c0 = arith.constant 0 : index
      %c0_21 = arith.constant 0 : index
      %c0_22 = arith.constant 0 : index
      %c0_23 = arith.constant 0 : index
      %30 = tpu.strided_load %arg4[%29, %c0, %c0_21, %c0_22, %c0_23] {strides = array<i32: 1, 1, 1, 1, 2>} : memref<2x1x2x8x16xf32, #tpu.memory_space<vmem>>, vector<1x1x2x8x8xf32>
      %31 = vector.shape_cast %30 : vector<1x1x2x8x8xf32> to vector<1x2x8x8xf32>
      %c0_24 = arith.constant 0 : index
      %c0_25 = arith.constant 0 : index
      %c0_26 = arith.constant 0 : index
      %c0_27 = arith.constant 0 : index
      %32 = vector.load %arg3[%c0_24, %c0_25, %c0_26, %c0_27] : memref<1x2x8x8xf32, #tpu.memory_space<vmem>>, vector<1x2x8x8xf32>
      tpu.vector_store %arg3[%c0_24, %c0_25, %c0_26, %c0_27], %31 {strides = array<i32>} : memref<1x2x8x8xf32, #tpu.memory_space<vmem>>, vector<1x2x8x8xf32>,
    } else {
    }
    %c2_i32_0 = arith.constant 2 : i32
    %3 = arith.cmpi sge, %arg1, %c2_i32_0 : i32
    %4 = arith.extui %3 : i1 to i32
    %c0_i32_1 = arith.constant 0 : i32
    %5 = arith.cmpi ne, %4, %c0_i32_1 : i32
    scf.if %5 {
      %cst = arith.constant 0.000000e+00 : f32
      %6 = vector.broadcast %cst : f32 to vector<1x2x8x8xf32>
      %c0 = arith.constant 0 : index
      %c0_2 = arith.constant 0 : index
      %c0_3 = arith.constant 0 : index
      %c0_4 = arith.constant 0 : index
      %7 = vector.load %arg3[%c0, %c0_2, %c0_3, %c0_4] : memref<1x2x8x8xf32, #tpu.memory_space<vmem>>, vector<1x2x8x8xf32>
      tpu.vector_store %arg3[%c0, %c0_2, %c0_3, %c0_4], %6 {strides = array<i32>} : memref<1x2x8x8xf32, #tpu.memory_space<vmem>>, vector<1x2x8x8xf32>,
    } else {
    }
    return
  }
  func.func @transform_1(%arg0: i32, %arg1: i32) -> (i32, i32, i32, i32) {
    %c0_i32 = arith.constant 0 : i32
    %c0_i32_0 = arith.constant 0 : i32
    %c0_i32_1 = arith.constant 0 : i32
    return %arg0, %arg1, %c0_i32, %c0_i32_0 : i32, i32, i32, i32
  }
}

module attributes {stable_mosaic.version = 11 : i64} {
  func.func @_portable_kernel(%arg0: i32, %arg1: i32, %arg2: memref<1x2x16x16xf32, #tpu.memory_space<vmem>>, %arg3: memref<1x2x8x8xf32, #tpu.memory_space<vmem>>) attributes {dimension_semantics = [#tpu.dimension_semantics<parallel>, #tpu.dimension_semantics<arbitrary>], iteration_bounds = array<i64: 2, 4>, scalar_prefetch = 0 : i64, scratch_operands = 0 : i64, tpu.core_type = #tpu.core_type<tc>, window_params = [{transform_indices = @transform_0, window_bounds = array<i64: 1, 2, 16, 16>}, {transform_indices = @transform_1, window_bounds = array<i64: 1, 2, 8, 8>}]} {
    %c2_i32 = arith.constant 2 : i32
    %0 = arith.cmpi slt, %arg1, %c2_i32 : i32
    %1 = arith.extui %0 : i1 to i32
    %c0_i32 = arith.constant 0 : i32
    %2 = arith.cmpi ne, %1, %c0_i32 : i32
    scf.if %2 {
      %6 = tpu.iota {dimensions = array<i32: 0>} : vector<8x16xi32>
      %c2_i32_2 = arith.constant 2 : i32
      %7 = vector.broadcast %c2_i32_2 : i32 to vector<8x16xi32>
      %8 = arith.muli %7, %6 : vector<8x16xi32>
      %9 = tpu.iota {dimensions = array<i32: 1>} : vector<8x16xi32>
      %10 = arith.cmpi eq, %8, %9 : vector<8x16xi32>
      %11 = arith.extui %10 : vector<8x16xi1> to vector<8x16xi32>
      %12 = arith.sitofp %11 : vector<8x16xi32> to vector<8x16xf32>
      %13 = tpu.iota {dimensions = array<i32: 0>} : vector<16x8xi32>
      %14 = tpu.iota {dimensions = array<i32: 1>} : vector<16x8xi32>
      %c2_i32_3 = arith.constant 2 : i32
      %15 = vector.broadcast %c2_i32_3 : i32 to vector<16x8xi32>
      %16 = arith.muli %15, %14 : vector<16x8xi32>
      %17 = arith.cmpi eq, %13, %16 : vector<16x8xi32>
      %18 = arith.extui %17 : vector<16x8xi1> to vector<16x8xi32>
      %19 = arith.sitofp %18 : vector<16x8xi32> to vector<16x8xf32>
      %c0 = arith.constant 0 : index
      %c0_4 = arith.constant 0 : index
      %c0_5 = arith.constant 0 : index
      %c0_6 = arith.constant 0 : index
      %20 = vector.load %arg2[%c0, %c0_4, %c0_5, %c0_6] : memref<1x2x16x16xf32, #tpu.memory_space<vmem>>, vector<1x1x16x16xf32>
      %21 = vector.shape_cast %20 : vector<1x1x16x16xf32> to vector<16x16xf32>
      %22 = vector.shape_cast %12 : vector<8x16xf32> to vector<8x16x1xf32>
      %23 = vector.shape_cast %21 : vector<16x16xf32> to vector<1x16x16xf32>
      %24 = vector.broadcast %22 : vector<8x16x1xf32> to vector<8x16x16xf32>
      %25 = vector.broadcast %23 : vector<1x16x16xf32> to vector<8x16x16xf32>
      %26 = arith.mulf %24, %25 : vector<8x16x16xf32>
      %cst = arith.constant dense<0.000000e+00> : vector<8x16xf32>
      %27 = vector.multi_reduction <add>, %26, %cst [1] : vector<8x16x16xf32> to vector<8x16xf32>
      %28 = vector.shape_cast %27 : vector<8x16xf32> to vector<8x16x1xf32>
      %29 = vector.shape_cast %19 : vector<16x8xf32> to vector<1x16x8xf32>
      %30 = vector.broadcast %28 : vector<8x16x1xf32> to vector<8x16x8xf32>
      %31 = vector.broadcast %29 : vector<1x16x8xf32> to vector<8x16x8xf32>
      %32 = arith.mulf %30, %31 : vector<8x16x8xf32>
      %cst_7 = arith.constant dense<0.000000e+00> : vector<8x8xf32>
      %33 = vector.multi_reduction <add>, %32, %cst_7 [1] : vector<8x16x8xf32> to vector<8x8xf32>
      %c0_8 = arith.constant 0 : index
      %c0_9 = arith.constant 0 : index
      %c0_10 = arith.constant 0 : index
      %c0_11 = arith.constant 0 : index
      %34 = vector.load %arg3[%c0_8, %c0_9, %c0_10, %c0_11] : memref<1x2x8x8xf32, #tpu.memory_space<vmem>>, vector<1x1x8x8xf32>
      %35 = vector.shape_cast %34 : vector<1x1x8x8xf32> to vector<8x8xf32>
      %36 = vector.shape_cast %33 : vector<8x8xf32> to vector<1x1x8x8xf32>
      tpu.vector_store %arg3[%c0_8, %c0_9, %c0_10, %c0_11], %36 {strides = array<i32>} : memref<1x2x8x8xf32, #tpu.memory_space<vmem>>, vector<1x1x8x8xf32>,
      %c0_12 = arith.constant 0 : index
      %c1 = arith.constant 1 : index
      %c0_13 = arith.constant 0 : index
      %c0_14 = arith.constant 0 : index
      %37 = vector.load %arg2[%c0_12, %c1, %c0_13, %c0_14] : memref<1x2x16x16xf32, #tpu.memory_space<vmem>>, vector<1x1x16x16xf32>
      %38 = vector.shape_cast %37 : vector<1x1x16x16xf32> to vector<16x16xf32>
      %39 = vector.shape_cast %12 : vector<8x16xf32> to vector<8x16x1xf32>
      %40 = vector.shape_cast %38 : vector<16x16xf32> to vector<1x16x16xf32>
      %41 = vector.broadcast %39 : vector<8x16x1xf32> to vector<8x16x16xf32>
      %42 = vector.broadcast %40 : vector<1x16x16xf32> to vector<8x16x16xf32>
      %43 = arith.mulf %41, %42 : vector<8x16x16xf32>
      %cst_15 = arith.constant dense<0.000000e+00> : vector<8x16xf32>
      %44 = vector.multi_reduction <add>, %43, %cst_15 [1] : vector<8x16x16xf32> to vector<8x16xf32>
      %45 = vector.shape_cast %44 : vector<8x16xf32> to vector<8x16x1xf32>
      %46 = vector.shape_cast %19 : vector<16x8xf32> to vector<1x16x8xf32>
      %47 = vector.broadcast %45 : vector<8x16x1xf32> to vector<8x16x8xf32>
      %48 = vector.broadcast %46 : vector<1x16x8xf32> to vector<8x16x8xf32>
      %49 = arith.mulf %47, %48 : vector<8x16x8xf32>
      %cst_16 = arith.constant dense<0.000000e+00> : vector<8x8xf32>
      %50 = vector.multi_reduction <add>, %49, %cst_16 [1] : vector<8x16x8xf32> to vector<8x8xf32>
      %c0_17 = arith.constant 0 : index
      %c1_18 = arith.constant 1 : index
      %c0_19 = arith.constant 0 : index
      %c0_20 = arith.constant 0 : index
      %51 = vector.load %arg3[%c0_17, %c1_18, %c0_19, %c0_20] : memref<1x2x8x8xf32, #tpu.memory_space<vmem>>, vector<1x1x8x8xf32>
      %52 = vector.shape_cast %51 : vector<1x1x8x8xf32> to vector<8x8xf32>
      %53 = vector.shape_cast %50 : vector<8x8xf32> to vector<1x1x8x8xf32>
      tpu.vector_store %arg3[%c0_17, %c1_18, %c0_19, %c0_20], %53 {strides = array<i32>} : memref<1x2x8x8xf32, #tpu.memory_space<vmem>>, vector<1x1x8x8xf32>,
    } else {
    }
    %c2_i32_0 = arith.constant 2 : i32
    %3 = arith.cmpi sge, %arg1, %c2_i32_0 : i32
    %4 = arith.extui %3 : i1 to i32
    %c0_i32_1 = arith.constant 0 : i32
    %5 = arith.cmpi ne, %4, %c0_i32_1 : i32
    scf.if %5 {
      %cst = arith.constant 0.000000e+00 : f32
      %6 = vector.broadcast %cst : f32 to vector<1x2x8x8xf32>
      %c0 = arith.constant 0 : index
      %c0_2 = arith.constant 0 : index
      %c0_3 = arith.constant 0 : index
      %c0_4 = arith.constant 0 : index
      %7 = vector.load %arg3[%c0, %c0_2, %c0_3, %c0_4] : memref<1x2x8x8xf32, #tpu.memory_space<vmem>>, vector<1x2x8x8xf32>
      tpu.vector_store %arg3[%c0, %c0_2, %c0_3, %c0_4], %6 {strides = array<i32>} : memref<1x2x8x8xf32, #tpu.memory_space<vmem>>, vector<1x2x8x8xf32>,
    } else {
    }
    return
  }
  func.func @transform_0(%arg0: i32, %arg1: i32) -> (i32, i32, i32, i32) {
    %c1_i32 = arith.constant 1 : i32
    %0 = arith.minsi %arg1, %c1_i32 : i32
    %c0_i32 = arith.constant 0 : i32
    %c0_i32_0 = arith.constant 0 : i32
    %c0_i32_1 = arith.constant 0 : i32
    return %arg0, %0, %c0_i32, %c0_i32_0 : i32, i32, i32, i32
  }
  func.func @transform_1(%arg0: i32, %arg1: i32) -> (i32, i32, i32, i32) {
    %c0_i32 = arith.constant 0 : i32
    %c0_i32_0 = arith.constant 0 : i32
    %c0_i32_1 = arith.constant 0 : i32
    return %arg0, %arg1, %c0_i32, %c0_i32_0 : i32, i32, i32, i32
  }
}

</mosaic_0001>

<bundles_post_ra>
// kernel: tpu_custom_call.1
= control target key start
LH: loop header
LB: loop body
LE: loop exit
PB: predicated region body
PF: predicated region fallthrough
CT: control target
= control target key end

     0   :  { %6 = vsyncpa [#allocation3], 0  ;;  %s1613_s0 = inlined_call_operand.hbm [shape: f32[2,4,16,16], index: 0, kind: input, shape index: {}]   ;;  %s1614_s1 = inlined_call_operand.hbm [shape: f32[2,8,8,8], index: 1, kind: output, shape index: {}]  }
   0x1   :  { %8 = vsyncpa [#allocation3 + $0x1], 0 }
   0x2   :  { %9 = vsyncpa [#allocation4], 0 }
   0x3   :  { %11 = vsyncpa [#allocation4 + $0x1], 0  ;;  %s1205_s6 = smov 0   ;;  %s1207_s7 = smov 0  }
   0x4   :  { %s1209_s8 = smov 0   ;;  %s1211_s9 = smov 0  }
   0x5   :  { %s1213_s10 = smov 0   ;;  %s1215_s11 = smov 0  }
   0x6   :  { %s1217_s12 = smov 0   ;;  %s1219_s13 = smov 0  }
   0x7   :  { %s1221_s14 = smov 0   ;;  %s1223_s15 = smov 0  }
   0x8   :  { %s1225_s16 = smov 0  }
   0x9 LB: > { %s898_s17 = sadd.s32 4294967295, %s1185_s16   ;;  %s899_s18 = sadd.s32 4294967294, %s1185_s16   ;;  %s1185_s16 = sphi %s1225_s16, %s17_s16   ;;  %s1181_s15 = sphi %s1223_s15, %s1638_s15   ;;  %s1177_s14 = sphi %s1221_s14, %s1637_s14   ;;  %s1173_s13 = sphi %s1219_s13, %s1636_s13   ;;  %s1169_s12 = sphi %s1217_s12, %s1635_s12   ;;  %s1165_s11 = sphi %s1215_s11, %s1634_s11   ;;  %s1161_s10 = sphi %s1213_s10, %s1633_s10   ;;  %s1157_s9 = sphi %s1211_s9, %s1632_s9   ;;  %s1153_s8 = sphi %s1209_s8, %s1631_s8   ;;  %s1149_s7 = sphi %s1207_s7, %s1630_s7   ;;  %s1145_s6 = sphi %s1205_s6, %s1629_s6  }
   0xa   : > { %s26_s19 = sadd.s32 1, %s1177_s14  ;;  %s29_s20 = sadd.s32 1, %s1181_s15 }
   0xb   : > { %p27_p0 = scmp.ge.s32.totalorder %s26_s19, 4  ;;  %p33_p1 = scmp.lt.s32.totalorder %s1177_s14, 1 }
   0xc   : > { %s42_s21 = sadd.s32 1, %s1165_s11  ;;  %p49_p2 = scmp.ne.s32.totalorder %s1165_s11, %s1161_s10 }
   0xd   : > { %s1640_s19 = smov (%p27_p0, %s26_s19), 0  ;;  %s1642_s20 = smov (!%p27_p0, %s29_s20), %s1181_s15 }
   0xe   : > { %1618 = sst [smem:[#allocation8_spill]] %s1640_s19  ;;  %p31_p3 = scmp.ge.s32.totalorder %s1642_s20, 2 }
   0xf   : > { %s1272_s22 = scalar_select %p33_p1, %s1177_s14, 1 }
  0x10   : > { %p35_p4 = scmp.lt.s32.totalorder %s1640_s19, 1  ;;  %p50_p5 = scmp.eq.s32.totalorder %s1185_s16, 0 }
  0x11   : > { %p55_p6 = scmp.ne.s32.totalorder %s1161_s10, %s1157_s9  ;;  %s1644_s20 = smov (%p31_p3, %s1642_s20), 0 }
  0x12   : > { %1619 = sst [smem:[#allocation9_spill]] %s1644_s20  ;;  %s37_s24 = ssub.s32 %s1181_s15, %s1644_s20 }
  0x13   : > { %s36_s23 = scalar_select %p35_p4, %s1640_s19, 1 }
  0x14   : > { %p1283_p7 = por %p50_p5, %p49_p2  ;;  %p56_p8 = scmp.eq.s32.totalorder %s898_s17, 0 }
  0x15   : > { %s38_s26 = ssub.s32 %s1272_s22, %s36_s23  ;;  %s66_s28 = ssub.s32 %s1177_s14, %s1640_s19 }
  0x16   : > { %s39_s27 = sor.u32 %s38_s26, %s37_s24  ;;  %p1292_p10 = por %p56_p8, %p55_p6 }
  0x17   : > { %p40_p9 = scmp.eq.s32.totalorder %s39_s27, 0  ;;  %s67_s30 = sor.u32 %s66_s28, %s37_s24 }
  0x18   : > { %s70_s2 = sadd.s32 1, %s1153_s8  ;;  %p68_p11 = scmp.eq.s32.totalorder %s67_s30, 0 }
  0x19   : > { %s1298_s3 = scalar_select %p40_p9, %s1165_s11, %s42_s21  }
  0x1a   : > { %p80_p12 = scmp.ne.s32.totalorder %s1153_s8, %s1149_s7  ;;  %p81_p13 = scmp.eq.s32.totalorder %s898_s17, 7 }
  0x1b   : > { %p86_p0 = scmp.ne.s32.totalorder %s1149_s7, %s1145_s6  ;;  %p87_p2 = scmp.eq.s32.totalorder %s899_s18, 7 }
  0x1c   : > { %s1307_s4 = scalar_select %p68_p11, %s1153_s8, %s70_s2  }
  0x1d   : > { %p1309_p1 = por %p81_p13, %p80_p12  ;;  %p937_p3 = scmp.lt.s32.totalorder %s1185_s16, 8 }
  0x1e   : > { %p1316_p4 = por %p87_p2, %p86_p0  ;;  %s107_s21 = sand.u32 1, %s1165_s11  }
  0x1f   : > { %s1622_s5 = scalar_select %p1309_p1, 1, 0 }
  0x20   : > { %s1623_s9 = scalar_select %p1316_p4, 1, 0 }
  0x21   : > { %s902_s23 = sshll.u32 %s107_s21, 5  ;;  %s924_s24 = sshll.u32 %s1272_s22, 2 }
  0x22   : > { %s905_s26 = sshll.u32 %s1181_s15, 3  ;;  %s111_s17 = scalar_lea.vmem [#allocation2], %s902_s23 }
  0x23   : > { %s123_s27 = sshll.u32 %s111_s17, 4  ;;  %s120_s28 = sadd.s32 %s924_s24, %s905_s26  ;;  %s1323_s27 = int_to_ptr.vmem [resolvable:$true] %s123_s27 }
  0x24   : > { %s906_s30 = sshll.u32 %s120_s28, 7  ;;  %p1327_p5 = pnand %p937_p3, %p1283_p7 }
  0x25   : > { %s1334_s19 = scalar_lea.hbm %s1613_s0, %s906_s30  ;;  %s1336_s22 = scalar_lea.sflag [#allocation3], %s107_s21 }
  0x26   : > { %s1033_s23 = scalar_lea.hbm %s1334_s19, 512  ;;  %p1035_p7 = pneg %p1327_p5 }
  0x27   : > { %p1034_p6 = scmp.ne.s32.totalorder %s1334_s19, %s1033_s23  ;;  %s1038_s24 = scalar_lea.hbm %s1613_s0, 2048 }
  0x28   : > { %p1039_p11 = scmp.lt.u32.totalorder %s1334_s19, %s1613_s0  ;;  %p1040_p12 = scmp.lt.u32.totalorder %s1038_s24, %s1033_s23 }
  0x29   : > { %p1036_p8 = pnand %p1035_p7, %p1034_p6  ;;  %p1042_p0 = scmp.lt.u32.totalorder %s1033_s23, %s1334_s19 }
  0x2a   : > { %p1041_p13 = por %p1040_p12, %p1039_p11 }
  0x2b   : > { %p1037_p9 = pneg %p1036_p8 }
  0x2c   : > { %p1043_p2 = por %p1042_p0, %p1041_p13 }
  0x2e   : > { %p1044_p3 = pnand %p1043_p2, %p1037_p9 }
  0x30   : > { %1047 = shalt.err (!%p1044_p3)
}
  0x31   : > { %s1048_s21 = scalar_lea.vmem %s1323_s27, 512  ;;  %s1187_s28 = smov [#allocation2]  }
  0x32   : > { %p1049_p6 = scmp.ne.s32.totalorder %s1323_s27, %s1048_s21  ;;  %s1053_s30 = sshll.u32 %s1187_s28, 4  ;;  %s1054_s30 = int_to_ptr.vmem [resolvable:$false] %s1053_s30 }
  0x33   : > { %s1055_s18 = scalar_lea.vmem %s1054_s30, 1024  ;;  %p1056_p1 = scmp.lt.s32.totalorder %s1323_s27, %s1054_s30 }
  0x34   : > { %p1051_p8 = pnand %p1049_p6, %p1035_p7  ;;  %p1057_p11 = scmp.lt.s32.totalorder %s1055_s18, %s1048_s21 }
  0x36   : > { %p1052_p4 = pneg %p1051_p8  ;;  %p1058_p12 = por %p1057_p11, %p1056_p1 }
  0x38   : > { %p1059_p13 = pnand %p1058_p12, %p1052_p4 }
  0x3a   : > { %1062 = shalt.err (!%p1059_p13)
}
  0x3b   : > { %s1188_s23 = smov 128   ;;  %s1189_s25 = smov 8  }
  0x3c   : > { %932 = dma.hbm_to_vmem [thread:$0]  (!%p1327_p5), %s1334_s19, 512, %s1323_s27, %s1336_s22, %s1188_s23, %s1188_s23, %s1189_s25  }
  0x3d   : > { %p907_p7 = scmp.ge.s32.totalorder %s1185_s16, 1  ;;  %p131_p9 = scmp.lt.s32.totalorder %s1185_s16, 9 }
  0x3f   : > { %p132_p0 = pnand %p907_p7, %p131_p9 }
  0x40   : > { %s137_s20 = sand.u32 (!%p132_p0), 1, %s1161_s10  }
  0x41   : > { %135 = sbr.rel (%p132_p0) target bundleno = 451 (0x1c3), region = 24  ;;  %s908_s24 = sshll.u32 (!%p132_p0), %s137_s20, 5 }
  0x42   : > { %s138_s26 = scalar_lea.sflag (!%p132_p0), [#allocation3], %s137_s20  ;;  %s1367_s17 = scalar_lea.vmem (!%p132_p0), [#allocation2], %s908_s24 }
  0x48   : > { %1136 = dma.done.wait (%p1292_p10), %s138_s26, 512  }
  0x49   : > { %1138 = vsyncadd (%p1292_p10), %s138_s26, 4294966784  ;;  %s157_s2 = sand.u32 1, %s1149_s7   ;;  %p910_p1 = scmp.ge.s32.totalorder %s1169_s12, 2 }
  0x4a   : > { %s909_s19 = sshll.u32 %s157_s2, 4  ;;  %v168_v0 = vlaneseq (!%p910_p1)  ;;  %v1190_v8 = vmov (!%p910_p1), 0.0   ;;  %v1384_v26 = vld [vmem:[%s1367_s17] sm:$0xff] (!%p910_p1)  ;;  %v1387_v29 = vld [vmem:[%s1367_s17 + $0x10] sm:$0xff] (!%p910_p1)  ;;  %v1392_v32 = vld [vmem:[%s1367_s17 + $0x8] sm:$0xff] (!%p910_p1)  ;;  %vm290_vm3 = vcmask (!%p910_p1), 130048  }
  0x4b   : > { %s1376_s27 = scalar_lea.vmem [#allocation5], %s909_s19  ;;  %167 = sbr.rel (%p910_p1) target bundleno = 414 (0x19e), region = 32  ;;  %v1395_v33 = vld [vmem:[%s1367_s17 + $0x18] sm:$0xff] (!%p910_p1)  ;;  %vm435_vm4 = vcmask (!%p910_p1), 64512   ;;  %vm516_vm5 = vcmask (!%p910_p1), 1041409   ;;  %vm518_vm6 = vcmask (!%p910_p1), 1042434  }
  0x4c   : > { %v169_v1 = vshrl.u32 (!%p910_p1), %v168_v0, 7  ;;  %v172_v2 = vand.u32 (!%p910_p1), 127, %v168_v0  ;;  %vm520_vm7 = vcmask (!%p910_p1), 1043459   ;;  %vm522_vm8 = vcmask (!%p910_p1), 1044484  }
  0x4d   : > { %vm524_vm9 = vcmask (!%p910_p1), 1045509   ;;  %vm526_vm10 = vcmask (!%p910_p1), 1046534   ;;  %vm528_vm11 = vcmask (!%p910_p1), 1047559  }
  0x4e   : > { %v170_v3 = vmul.u32 (!%p910_p1), 2, %v169_v1  ;;  %v176_v4 = vadd.s32 (!%p910_p1), 8, %v169_v1  ;;  %v177_v5 = vmul.u32 (!%p910_p1), 2, %v172_v2  ;;  %v199_v6 = vsub.s32 (!%p910_p1), 1, %v169_v1 }
  0x4f   : > { %v188_v7 = vsub.s32 (!%p910_p1), 0, %v169_v1  ;;  %v210_v14 = vsub.s32 (!%p910_p1), 2, %v169_v1  ;;  %v221_v16 = vsub.s32 (!%p910_p1), 3, %v169_v1  ;;  %v232_v18 = vsub.s32 (!%p910_p1), 4, %v169_v1 }
  0x50   : > { %vm173_vm0 = vcmp.eq.s32.totalorder (!%p910_p1), %v170_v3, %v172_v2  ;;  %vm178_vm1 = vcmp.eq.s32.totalorder (!%p910_p1), %v169_v1, %v177_v5  ;;  %vm179_vm2 = vcmp.eq.s32.totalorder (!%p910_p1), %v176_v4, %v177_v5  ;;  %v243_v20 = vsub.s32 (!%p910_p1), 5, %v169_v1 }
  0x51   : > { %v911_v9 = vsel (!%p910_p1), %vm173_vm0, 1.0, %v1190_v8  ;;  %v1379_v10 = vsel (!%p910_p1), %vm178_vm1, 1.0, %v1190_v8  ;;  %v1381_v11 = vsel (!%p910_p1), %vm179_vm2, 1.0, %v1190_v8  ;;  %v254_v22 = vsub.s32 (!%p910_p1), 6, %v169_v1 }
  0x52   : > { %v200_v12 = vrot.slane %v911_v9, %v199_v6  ;;  %v189_v13 = vrot.slane %v911_v9, %v188_v7  ;;  %v211_v15 = vrot.slane %v911_v9, %v210_v14  ;;  %v222_v17 = vrot.slane %v911_v9, %v221_v16 }
  0x53   : > { %v233_v19 = vrot.slane %v911_v9, %v232_v18  ;;  %v244_v21 = vrot.slane %v911_v9, %v243_v20  ;;  %v255_v23 = vrot.slane %v911_v9, %v254_v22  ;;  %v265_v24 = vsub.s32 7, %v169_v1 }
  0x54   : > { %202 = vbcast.lane.b32.xlu1 %v200_v12, 256  ;;  %191 = vbcast.lane.b32.xlu0 %v189_v13, 256 }
  0x55   : > { %v266_v25 = vrot.slane %v911_v9, %v265_v24 }
  0x58   : > { %206 = vbcast.lane.b32.xlu1 %v200_v12, 264  ;;  %195 = vbcast.lane.b32.xlu0 %v189_v13, 264 }
  0x5c   : > { %217 = vbcast.lane.b32.xlu1 %v211_v15, 264  ;;  %213 = vbcast.lane.b32.xlu0 %v211_v15, 256 }
  0x60   : > { %228 = vbcast.lane.b32.xlu1 %v222_v17, 264  ;;  %224 = vbcast.lane.b32.xlu0 %v222_v17, 256 }
  0x64   : > { %239 = vbcast.lane.b32.xlu1 %v233_v19, 264  ;;  %235 = vbcast.lane.b32.xlu0 %v233_v19, 256 }
  0x68   : > { %250 = vbcast.lane.b32.xlu1 %v244_v21, 264  ;;  %246 = vbcast.lane.b32.xlu0 %v244_v21, 256 }
  0x6c   : > { %261 = vbcast.lane.b32.xlu1 %v255_v23, 264  ;;  %257 = vbcast.lane.b32.xlu0 %v255_v23, 256 }
  0x70   : > { %272 = vbcast.lane.b32.xlu1 %v266_v25, 264  ;;  %268 = vbcast.lane.b32.xlu0 %v266_v25, 256 }
  0xc6   : > { %v203_v27 = vpop.permute.xlu1 %202  ;;  %v192_v28 = vpop.permute.xlu0 %191 }
  0xc7   : > { %v276_v30 = vmul.f32 %v203_v27, %v1384_v26  ;;  %v537_v31 = vmul.f32 %v1387_v29, %v203_v27  ;;  %v274_v34 = vmul.f32 %v192_v28, %v1384_v26  ;;  %v535_v36 = vmul.f32 %v1387_v29, %v192_v28 }
  0xc9   : > { %v300_v35 = vsel %vm290_vm3, %v276_v30, 0.0  ;;  %v560_v43 = vsel %vm290_vm3, %v537_v31, 0.0  ;;  %v291_v44 = vsel %vm290_vm3, %v274_v34, 0.0  ;;  %v551_v48 = vsel %vm290_vm3, %v535_v36, 0.0 }
  0xca   : > { %v207_v37 = vpop.permute.xlu1 %206  ;;  %v196_v38 = vpop.permute.xlu0 %195 }
  0xcb   : > { %v277_v39 = vmul.f32 %v207_v37, %v1392_v32  ;;  %v538_v40 = vmul.f32 %v1395_v33, %v207_v37  ;;  %v275_v41 = vmul.f32 %v196_v38, %v1392_v32  ;;  %v536_v42 = vmul.f32 %v1395_v33, %v196_v38 }
  0xcd   : > { %v301_v45 = vsel %vm290_vm3, %v277_v39, 0.0  ;;  %v292_v46 = vsel %vm290_vm3, %v275_v41, 0.0  ;;  %v552_v47 = vsel %vm290_vm3, %v536_v42, 0.0  ;;  %v561_v50 = vsel %vm290_vm3, %v538_v40, 0.0 }
  0xce   : > { %v302_v49 = vadd.f32 %v301_v45, %v300_v35  ;;  %v293_v51 = vadd.f32 %v292_v46, %v291_v44  ;;  %v218_v52 = vpop.permute.xlu1 %217  ;;  %v214_v53 = vpop.permute.xlu0 %213  ;;  %v553_v54 = vadd.f32 %v552_v47, %v551_v48  ;;  %v562_v63 = vadd.f32 %v561_v50, %v560_v43 }
  0xcf   : > { %v279_v55 = vmul.f32 %v218_v52, %v1392_v32  ;;  %v540_v56 = vmul.f32 %v1395_v33, %v218_v52  ;;  %v278_v57 = vmul.f32 %v214_v53, %v1384_v26  ;;  %v539_v60 = vmul.f32 %v1387_v29, %v214_v53 }
  0xd0   : > { %v303_v58 = vrot.slane %v302_v49, 4  ;;  %v294_v59 = vrot.slane %v293_v51, 4  ;;  %v554_v4 = vrot.slane %v553_v54, 4  ;;  %v563_v16 = vrot.slane %v562_v63, 4 }
  0xd1   : > { %v310_v61 = vsel %vm290_vm3, %v279_v55, 0.0  ;;  %v309_v62 = vsel %vm290_vm3, %v278_v57, 0.0  ;;  %v570_v5 = vsel %vm290_vm3, %v540_v56, 0.0  ;;  %v569_v9 = vsel %vm290_vm3, %v539_v60, 0.0 }
  0xd2   : > { %v229_v0 = vpop.permute.xlu1 %228  ;;  %v295_v1 = vadd.f32 %v294_v59, %v293_v51  ;;  %v225_v2 = vpop.permute.xlu0 %224  ;;  %v304_v3 = vadd.f32 %v303_v58, %v302_v49  ;;  %v311_v8 = vadd.f32 %v310_v61, %v309_v62  ;;  %v571_v21 = vadd.f32 %v570_v5, %v569_v9 }
  0xd3   : > { %v281_v6 = vmul.f32 %v229_v0, %v1392_v32  ;;  %v280_v7 = vmul.f32 %v225_v2, %v1384_v26  ;;  %v542_v14 = vmul.f32 %v1395_v33, %v229_v0  ;;  %v541_v15 = vmul.f32 %v1387_v29, %v225_v2 }
  0xd4   : > { %v296_v12 = vrot.slane %v295_v1, 2  ;;  %v305_v13 = vrot.slane %v304_v3, 2  ;;  %v555_v24 = vadd.f32 %v554_v4, %v553_v54  ;;  %v312_v25 = vrot.slane %v311_v8, 4 }
  0xd5   : > { %v319_v22 = vsel %vm290_vm3, %v281_v6, 0.0  ;;  %v318_v23 = vsel %vm290_vm3, %v280_v7, 0.0  ;;  %v579_v30 = vsel %vm290_vm3, %v542_v14, 0.0  ;;  %v578_v31 = vsel %vm290_vm3, %v541_v15, 0.0 }
  0xd6   : > { %v297_v17 = vadd.f32 %v296_v12, %v295_v1  ;;  %v306_v18 = vadd.f32 %v305_v13, %v304_v3  ;;  %v240_v19 = vpop.permute.xlu1 %239  ;;  %v236_v20 = vpop.permute.xlu0 %235  ;;  %v556_v34 = vrot.slane %v555_v24, 2  ;;  %v320_v37 = vadd.f32 %v319_v22, %v318_v23 }
  0xd7   : > { %v283_v28 = vmul.f32 %v240_v19, %v1392_v32  ;;  %v282_v35 = vmul.f32 %v236_v20, %v1384_v26  ;;  %v572_v39 = vrot.slane %v571_v21, 4  ;;  %v564_v41 = vadd.f32 %v563_v16, %v562_v63 }
  0xd8   : > { %v298_v27 = vrot.slane %v297_v17, 1  ;;  %v307_v38 = vrot.slane %v306_v18, 1  ;;  %v557_v40 = vadd.f32 %v556_v34, %v555_v24  ;;  %v580_v42 = vadd.f32 %v579_v30, %v578_v31 }
  0xd9   : > { %v328_v43 = vsel %vm290_vm3, %v283_v28, 0.0  ;;  %v544_v44 = vmul.f32 %v1395_v33, %v240_v19  ;;  %v313_v45 = vadd.f32 %v312_v25, %v311_v8  ;;  %v327_v47 = vsel %vm290_vm3, %v282_v35, 0.0 }
  0xda   : > { %v299_v36 = vadd.f32 %v298_v27, %v297_v17  ;;  %v558_v46 = vrot.slane %v557_v40, 1  ;;  %v543_v48 = vmul.f32 %v1387_v29, %v236_v20  ;;  %v565_v49 = vrot.slane %v564_v41, 2  ;;  %v251_v52 = vpop.permute.xlu1 %250  ;;  %v247_v54 = vpop.permute.xlu0 %246 }
  0xdb   : > { %v321_v50 = vrot.slane %v320_v37, 4  ;;  %v308_v51 = vadd.f32 %v307_v38, %v306_v18  ;;  %v314_v53 = vrot.slane %v313_v45, 2  ;;  %v581_v56 = vrot.slane %v580_v42, 4 }
  0xdc   : > { %368 = vbcast.lane.b32.xlu1 %v299_v36, 264  ;;  %364 = vbcast.lane.b32.xlu0 %v299_v36, 256  ;;  %v566_v55 = vadd.f32 %v565_v49, %v564_v41  ;;  %v588_v57 = vsel %vm290_vm3, %v544_v44, 0.0  ;;  %v329_v58 = vadd.f32 %v328_v43, %v327_v47  ;;  %v573_v59 = vadd.f32 %v572_v39, %v571_v21 }
  0xdd   : > { %v559_v60 = vadd.f32 %v558_v46, %v557_v40  ;;  %v587_v61 = vsel %vm290_vm3, %v543_v48, 0.0  ;;  %v285_v62 = vmul.f32 %v251_v52, %v1392_v32  ;;  %v284_v63 = vmul.f32 %v247_v54, %v1384_v26 }
  0xde   : > { %v567_v0 = vrot.slane %v566_v55, 1  ;;  %v315_v1 = vadd.f32 %v314_v53, %v313_v45  ;;  %v574_v2 = vrot.slane %v573_v59, 2  ;;  %v322_v3 = vadd.f32 %v321_v50, %v320_v37  ;;  %v262_v16 = vpop.permute.xlu1 %261  ;;  %v258_v17 = vpop.permute.xlu0 %257 }
  0xdf   : > { %v330_v4 = vrot.slane %v329_v58, 4  ;;  %v589_v5 = vadd.f32 %v588_v57, %v587_v61  ;;  %v546_v6 = vmul.f32 %v1395_v33, %v251_v52  ;;  %v337_v7 = vsel %vm290_vm3, %v285_v62, 0.0 }
  0xe0   : > { %375 = vbcast.lane.b32.xlu1 %v308_v51, 264  ;;  %371 = vbcast.lane.b32.xlu0 %v308_v51, 256  ;;  %v336_v8 = vsel %vm290_vm3, %v284_v63, 0.0  ;;  %v545_v9 = vmul.f32 %v1387_v29, %v247_v54  ;;  %v323_v12 = vrot.slane %v322_v3, 2  ;;  %v568_v13 = vadd.f32 %v567_v0, %v566_v55 }
  0xe1   : > { %v316_v14 = vrot.slane %v315_v1, 1  ;;  %v575_v15 = vadd.f32 %v574_v2, %v573_v59  ;;  %v582_v18 = vadd.f32 %v581_v56, %v580_v42  ;;  %v590_v19 = vrot.slane %v589_v5, 4 }
  0xe2   : > { %v597_v20 = vsel %vm290_vm3, %v546_v6, 0.0  ;;  %v338_v21 = vadd.f32 %v337_v7, %v336_v8  ;;  %v596_v22 = vsel %vm290_vm3, %v545_v9, 0.0  ;;  %v287_v23 = vmul.f32 %v262_v16, %v1392_v32  ;;  %v273_v41 = vpop.permute.xlu1 %272  ;;  %v269_v45 = vpop.permute.xlu0 %268 }
  0xe3   : > { %v324_v24 = vadd.f32 %v323_v12, %v322_v3  ;;  %v286_v25 = vmul.f32 %v258_v17, %v1384_v26  ;;  %v317_v27 = vadd.f32 %v316_v14, %v315_v1  ;;  %v576_v28 = vrot.slane %v575_v15, 1 }
  0xe4   : > { %628 = vbcast.lane.b32.xlu1 %v559_v60, 264  ;;  %624 = vbcast.lane.b32.xlu0 %v559_v60, 256  ;;  %v583_v30 = vrot.slane %v582_v18, 2  ;;  %v331_v31 = vadd.f32 %v330_v4, %v329_v58  ;;  %v339_v34 = vrot.slane %v338_v21, 4  ;;  %v598_v35 = vadd.f32 %v597_v20, %v596_v22 }
  0xe5   : > { %v548_v36 = vmul.f32 %v1395_v33, %v262_v16  ;;  %v346_v37 = vsel %vm290_vm3, %v287_v23, 0.0  ;;  %v325_v38 = vrot.slane %v324_v24, 1  ;;  %v345_v39 = vsel %vm290_vm3, %v286_v25, 0.0 }
  0xe6   : > { %v547_v40 = vmul.f32 %v1387_v29, %v258_v17  ;;  %v577_v42 = vadd.f32 %v576_v28, %v575_v15  ;;  %v584_v43 = vadd.f32 %v583_v30, %v582_v18  ;;  %v332_v44 = vrot.slane %v331_v31, 2 }
  0xe7   : > { %v591_v46 = vadd.f32 %v590_v19, %v589_v5  ;;  %v599_v47 = vrot.slane %v598_v35, 4  ;;  %v606_v48 = vsel %vm290_vm3, %v548_v36, 0.0  ;;  %v289_v49 = vmul.f32 %v273_v41, %v1392_v32 }
  0xe8   : > { %635 = vbcast.lane.b32.xlu1 %v568_v13, 264  ;;  %631 = vbcast.lane.b32.xlu0 %v568_v13, 256  ;;  %v326_v50 = vadd.f32 %v325_v38, %v324_v24  ;;  %v347_v51 = vadd.f32 %v346_v37, %v345_v39  ;;  %v605_v52 = vsel %vm290_vm3, %v547_v40, 0.0  ;;  %v288_v53 = vmul.f32 %v269_v45, %v1384_v26 }
  0xe9   : > { %v585_v54 = vrot.slane %v584_v43, 1  ;;  %v333_v55 = vadd.f32 %v332_v44, %v331_v31  ;;  %v592_v56 = vrot.slane %v591_v46, 2  ;;  %v340_v57 = vadd.f32 %v339_v34, %v338_v21 }
  0xea   : > { %v607_v58 = vadd.f32 %v606_v48, %v605_v52  ;;  %v355_v59 = vsel %vm290_vm3, %v289_v49, 0.0  ;;  %v550_v60 = vmul.f32 %v1395_v33, %v273_v41  ;;  %v348_v61 = vrot.slane %v347_v51, 4 }
  0xeb   : > { %v354_v32 = vsel %vm290_vm3, %v288_v53, 0.0  ;;  %v549_v62 = vmul.f32 %v1387_v29, %v269_v45  ;;  %v600_v63 = vadd.f32 %v599_v47, %v598_v35  ;;  %v586_v0 = vadd.f32 %v585_v54, %v584_v43 }
  0xec   : > { %382 = vbcast.lane.b32.xlu1 %v317_v27, 264  ;;  %378 = vbcast.lane.b32.xlu0 %v317_v27, 256  ;;  %v334_v1 = vrot.slane %v333_v55, 1  ;;  %v593_v26 = vadd.f32 %v592_v56, %v591_v46  ;;  %v341_v2 = vrot.slane %v340_v57, 2  ;;  %v615_v3 = vsel %vm290_vm3, %v550_v60, 0.0 }
  0xed   : > { %v608_v4 = vrot.slane %v607_v58, 4  ;;  %v356_v5 = vadd.f32 %v355_v59, %v354_v32  ;;  %v614_v6 = vsel %vm290_vm3, %v549_v62, 0.0  ;;  %v601_v7 = vrot.slane %v600_v63, 2 }
  0xee   : > { %v335_v33 = vadd.f32 %v334_v1, %v333_v55  ;;  %v594_v8 = vrot.slane %v593_v26, 1  ;;  %v342_v9 = vadd.f32 %v341_v2, %v340_v57  ;;  %v349_v12 = vadd.f32 %v348_v61, %v347_v51 }
  0xef   : > { %v357_v29 = vrot.slane %v356_v5, 4  ;;  %v616_v13 = vadd.f32 %v615_v3, %v614_v6  ;;  %v602_v14 = vadd.f32 %v601_v7, %v600_v63  ;;  %v609_v18 = vadd.f32 %v608_v4, %v607_v58 }
  0xf0   : > { %642 = vbcast.lane.b32.xlu1 %v577_v42, 264  ;;  %638 = vbcast.lane.b32.xlu0 %v577_v42, 256  ;;  %v595_v15 = vadd.f32 %v594_v8, %v593_v26  ;;  %v343_v16 = vrot.slane %v342_v9, 1  ;;  %v350_v17 = vrot.slane %v349_v12, 2 }
  0xf1   : > { %v617_v19 = vrot.slane %v616_v13, 4  ;;  %v358_v20 = vadd.f32 %v357_v29, %v356_v5  ;;  %v603_v22 = vrot.slane %v602_v14, 1  ;;  %v610_v24 = vrot.slane %v609_v18, 2 }
  0xf2   : > { %v344_v21 = vadd.f32 %v343_v16, %v342_v9  ;;  %v351_v23 = vadd.f32 %v350_v17, %v349_v12 }
  0xf3   : > { %v618_v25 = vadd.f32 %v617_v19, %v616_v13  ;;  %v604_v27 = vadd.f32 %v603_v22, %v602_v14  ;;  %v611_v30 = vadd.f32 %v610_v24, %v609_v18  ;;  %v359_v31 = vrot.slane %v358_v20, 2 }
  0xf4   : > { %389 = vbcast.lane.b32.xlu1 %v326_v50, 264  ;;  %385 = vbcast.lane.b32.xlu0 %v326_v50, 256  ;;  %v352_v28 = vrot.slane %v351_v23, 1 }
  0xf5   : > { %v612_v35 = vrot.slane %v611_v30, 1  ;;  %v360_v36 = vadd.f32 %v359_v31, %v358_v20  ;;  %v619_v37 = vrot.slane %v618_v25, 2 }
  0xf6   : > { %v353_v34 = vadd.f32 %v352_v28, %v351_v23 }
  0xf7   : > { %v613_v38 = vadd.f32 %v612_v35, %v611_v30  ;;  %v361_v39 = vrot.slane %v360_v36, 1  ;;  %v620_v40 = vadd.f32 %v619_v37, %v618_v25 }
  0xf8   : > { %649 = vbcast.lane.b32.xlu1 %v586_v0, 264  ;;  %645 = vbcast.lane.b32.xlu0 %v586_v0, 256 }
  0xf9   : > { %v362_v41 = vadd.f32 %v361_v39, %v360_v36  ;;  %v621_v42 = vrot.slane %v620_v40, 1 }
  0xfb   : > { %v622_v43 = vadd.f32 %v621_v42, %v620_v40 }
  0xfc   : > { %396 = vbcast.lane.b32.xlu1 %v335_v33, 264  ;;  %392 = vbcast.lane.b32.xlu0 %v335_v33, 256 }
 0x100   : > { %656 = vbcast.lane.b32.xlu1 %v595_v15, 264  ;;  %652 = vbcast.lane.b32.xlu0 %v595_v15, 256 }
 0x104   : > { %403 = vbcast.lane.b32.xlu1 %v344_v21, 264  ;;  %399 = vbcast.lane.b32.xlu0 %v344_v21, 256 }
 0x108   : > { %663 = vbcast.lane.b32.xlu1 %v604_v27, 264  ;;  %659 = vbcast.lane.b32.xlu0 %v604_v27, 256 }
 0x10c   : > { %410 = vbcast.lane.b32.xlu1 %v353_v34, 264  ;;  %406 = vbcast.lane.b32.xlu0 %v353_v34, 256 }
 0x110   : > { %670 = vbcast.lane.b32.xlu1 %v613_v38, 264  ;;  %666 = vbcast.lane.b32.xlu0 %v613_v38, 256 }
 0x114   : > { %417 = vbcast.lane.b32.xlu1 %v362_v41, 264  ;;  %413 = vbcast.lane.b32.xlu0 %v362_v41, 256 }
 0x118   : > { %677 = vbcast.lane.b32.xlu1 %v622_v43, 264  ;;  %673 = vbcast.lane.b32.xlu0 %v622_v43, 256 }
 0x14e   : > { %v369_v44 = vpop.permute.xlu1 %368  ;;  %v365_v45 = vpop.permute.xlu0 %364 }
 0x14f   : > { %v420_v46 = vmul.f32 %v1381_v11, %v369_v44  ;;  %v419_v47 = vmul.f32 %v1379_v10, %v365_v45 }
 0x151   : > { %v437_v48 = vsel %vm435_vm4, %v420_v46, 0.0  ;;  %v436_v49 = vsel %vm435_vm4, %v419_v47, 0.0 }
 0x152   : > { %v438_v50 = vadd.f32 %v437_v48, %v436_v49  ;;  %v376_v51 = vpop.permute.xlu1 %375  ;;  %v372_v52 = vpop.permute.xlu0 %371 }
 0x153   : > { %v422_v53 = vmul.f32 %v1381_v11, %v376_v51  ;;  %v421_v54 = vmul.f32 %v1379_v10, %v372_v52 }
 0x154   : > { %v439_v55 = vrot.slane %v438_v50, 4 }
 0x155   : > { %v446_v56 = vsel %vm435_vm4, %v422_v53, 0.0  ;;  %v445_v57 = vsel %vm435_vm4, %v421_v54, 0.0 }
 0x156   : > { %v440_v58 = vadd.f32 %v439_v55, %v438_v50  ;;  %v447_v59 = vadd.f32 %v446_v56, %v445_v57  ;;  %v629_v60 = vpop.permute.xlu1 %628  ;;  %v625_v61 = vpop.permute.xlu0 %624 }
 0x157   : > { %v680_v32 = vmul.f32 %v1381_v11, %v629_v60  ;;  %v679_v62 = vmul.f32 %v1379_v10, %v625_v61 }
 0x158   : > { %v441_v63 = vrot.slane %v440_v58, 2  ;;  %v448_v0 = vrot.slane %v447_v59, 4 }
 0x159   : > { %v696_v1 = vsel %vm435_vm4, %v680_v32, 0.0  ;;  %v695_v26 = vsel %vm435_vm4, %v679_v62, 0.0 }
 0x15a   : > { %v442_v2 = vadd.f32 %v441_v63, %v440_v58  ;;  %v449_v3 = vadd.f32 %v448_v0, %v447_v59  ;;  %v697_v4 = vadd.f32 %v696_v1, %v695_v26  ;;  %v636_v5 = vpop.permute.xlu1 %635  ;;  %v632_v6 = vpop.permute.xlu0 %631 }
 0x15b   : > { %v682_v7 = vmul.f32 %v1381_v11, %v636_v5  ;;  %v681_v33 = vmul.f32 %v1379_v10, %v632_v6 }
 0x15c   : > { %v450_v8 = vrot.slane %v449_v3, 2  ;;  %v698_v9 = vrot.slane %v697_v4, 4  ;;  %v443_v12 = vrot.slane %v442_v2, 1 }
 0x15d   : > { %v705_v29 = vsel %vm435_vm4, %v682_v7, 0.0  ;;  %v704_v13 = vsel %vm435_vm4, %v681_v33, 0.0 }
 0x15e   : > { %v451_v14 = vadd.f32 %v450_v8, %v449_v3  ;;  %v699_v15 = vadd.f32 %v698_v9, %v697_v4  ;;  %v706_v16 = vadd.f32 %v705_v29, %v704_v13  ;;  %v383_v17 = vpop.permute.xlu1 %382  ;;  %v379_v18 = vpop.permute.xlu0 %378  ;;  %v444_v24 = vadd.f32 %v443_v12, %v442_v2 }
 0x15f   : > { %v424_v19 = vmul.f32 %v1381_v11, %v383_v17  ;;  %v423_v20 = vmul.f32 %v1379_v10, %v379_v18 }
 0x160   : > { %v452_v21 = vrot.slane %v451_v14, 1  ;;  %v700_v22 = vrot.slane %v699_v15, 2  ;;  %v707_v23 = vrot.slane %v706_v16, 4 }
 0x161   : > { %v455_v25 = vsel %vm435_vm4, %v424_v19, 0.0  ;;  %v454_v27 = vsel %vm435_vm4, %v423_v20, 0.0 }
 0x162   : > { %v453_v28 = vadd.f32 %v452_v21, %v451_v14  ;;  %v701_v30 = vadd.f32 %v700_v22, %v699_v15  ;;  %v708_v31 = vadd.f32 %v707_v23, %v706_v16  ;;  %v456_v34 = vadd.f32 %v455_v25, %v454_v27  ;;  %v643_v35 = vpop.permute.xlu1 %642  ;;  %v639_v36 = vpop.permute.xlu0 %638 }
 0x163   : > { %v684_v37 = vmul.f32 %v1381_v11, %v643_v35  ;;  %v683_v38 = vmul.f32 %v1379_v10, %v639_v36 }
 0x164   : > { %v517_v39 = vsel %vm516_vm5, %v453_v28, %v444_v24  ;;  %v709_v40 = vrot.slane %v708_v31, 2  ;;  %v457_v41 = vrot.slane %v456_v34, 4  ;;  %v702_v42 = vrot.slane %v701_v30, 1 }
 0x165   : > { %v714_v43 = vsel %vm435_vm4, %v684_v37, 0.0  ;;  %v713_v44 = vsel %vm435_vm4, %v683_v38, 0.0 }
 0x166   : > { %v710_v45 = vadd.f32 %v709_v40, %v708_v31  ;;  %v458_v46 = vadd.f32 %v457_v41, %v456_v34  ;;  %v715_v47 = vadd.f32 %v714_v43, %v713_v44  ;;  %v390_v48 = vpop.permute.xlu1 %389  ;;  %v386_v49 = vpop.permute.xlu0 %385  ;;  %v703_v55 = vadd.f32 %v702_v42, %v701_v30 }
 0x167   : > { %v426_v50 = vmul.f32 %v1381_v11, %v390_v48  ;;  %v425_v51 = vmul.f32 %v1379_v10, %v386_v49 }
 0x168   : > { %v711_v52 = vrot.slane %v710_v45, 1  ;;  %v459_v53 = vrot.slane %v458_v46, 2  ;;  %v716_v54 = vrot.slane %v715_v47, 4 }
 0x169   : > { %v464_v56 = vsel %vm435_vm4, %v426_v50, 0.0  ;;  %v463_v57 = vsel %vm435_vm4, %v425_v51, 0.0 }
 0x16a   : > { %v712_v58 = vadd.f32 %v711_v52, %v710_v45  ;;  %v460_v59 = vadd.f32 %v459_v53, %v458_v46  ;;  %v717_v60 = vadd.f32 %v716_v54, %v715_v47  ;;  %v465_v61 = vadd.f32 %v464_v56, %v463_v57  ;;  %v650_v32 = vpop.permute.xlu1 %649  ;;  %v646_v62 = vpop.permute.xlu0 %645 }
 0x16b   : > { %v686_v63 = vmul.f32 %v1381_v11, %v650_v32  ;;  %v685_v0 = vmul.f32 %v1379_v10, %v646_v62 }
 0x16c   : > { %v775_v1 = vsel %vm516_vm5, %v712_v58, %v703_v55  ;;  %v461_v26 = vrot.slane %v460_v59, 1  ;;  %v718_v2 = vrot.slane %v717_v60, 2  ;;  %v466_v3 = vrot.slane %v465_v61, 4 }
 0x16d   : > { %v723_v4 = vsel %vm435_vm4, %v686_v63, 0.0  ;;  %v722_v5 = vsel %vm435_vm4, %v685_v0, 0.0 }
 0x16e   : > { %v462_v6 = vadd.f32 %v461_v26, %v460_v59  ;;  %v719_v7 = vadd.f32 %v718_v2, %v717_v60  ;;  %v467_v33 = vadd.f32 %v466_v3, %v465_v61  ;;  %v724_v8 = vadd.f32 %v723_v4, %v722_v5  ;;  %v397_v9 = vpop.permute.xlu1 %396  ;;  %v393_v12 = vpop.permute.xlu0 %392 }
 0x16f   : > { %v428_v29 = vmul.f32 %v1381_v11, %v397_v9  ;;  %v427_v13 = vmul.f32 %v1379_v10, %v393_v12 }
 0x170   : > { %v519_v14 = vsel %vm518_vm6, %v462_v6, %v517_v39  ;;  %v720_v15 = vrot.slane %v719_v7, 1  ;;  %v468_v16 = vrot.slane %v467_v33, 2  ;;  %v725_v17 = vrot.slane %v724_v8, 4 }
 0x171   : > { %v473_v18 = vsel %vm435_vm4, %v428_v29, 0.0  ;;  %v472_v19 = vsel %vm435_vm4, %v427_v13, 0.0 }
 0x172   : > { %v721_v20 = vadd.f32 %v720_v15, %v719_v7  ;;  %v469_v21 = vadd.f32 %v468_v16, %v467_v33  ;;  %v726_v22 = vadd.f32 %v725_v17, %v724_v8  ;;  %v474_v23 = vadd.f32 %v473_v18, %v472_v19  ;;  %v657_v24 = vpop.permute.xlu1 %656  ;;  %v653_v25 = vpop.permute.xlu0 %652 }
 0x173   : > { %v688_v27 = vmul.f32 %v1381_v11, %v657_v24  ;;  %v687_v28 = vmul.f32 %v1379_v10, %v653_v25 }
 0x174   : > { %v776_v30 = vsel %vm518_vm6, %v721_v20, %v775_v1  ;;  %v470_v31 = vrot.slane %v469_v21, 1  ;;  %v727_v34 = vrot.slane %v726_v22, 2  ;;  %v475_v35 = vrot.slane %v474_v23, 4 }
 0x175   : > { %v732_v36 = vsel %vm435_vm4, %v688_v27, 0.0  ;;  %v731_v37 = vsel %vm435_vm4, %v687_v28, 0.0 }
 0x176   : > { %v471_v38 = vadd.f32 %v470_v31, %v469_v21  ;;  %v728_v39 = vadd.f32 %v727_v34, %v726_v22  ;;  %v476_v40 = vadd.f32 %v475_v35, %v474_v23  ;;  %v733_v41 = vadd.f32 %v732_v36, %v731_v37  ;;  %v404_v42 = vpop.permute.xlu1 %403  ;;  %v400_v43 = vpop.permute.xlu0 %399 }
 0x177   : > { %v430_v44 = vmul.f32 %v1381_v11, %v404_v42  ;;  %v429_v45 = vmul.f32 %v1379_v10, %v400_v43 }
 0x178   : > { %v521_v46 = vsel %vm520_vm7, %v471_v38, %v519_v14  ;;  %v729_v47 = vrot.slane %v728_v39, 1  ;;  %v477_v48 = vrot.slane %v476_v40, 2  ;;  %v734_v49 = vrot.slane %v733_v41, 4 }
 0x179   : > { %v482_v50 = vsel %vm435_vm4, %v430_v44, 0.0  ;;  %v481_v51 = vsel %vm435_vm4, %v429_v45, 0.0 }
 0x17a   : > { %v730_v52 = vadd.f32 %v729_v47, %v728_v39  ;;  %v478_v53 = vadd.f32 %v477_v48, %v476_v40  ;;  %v735_v54 = vadd.f32 %v734_v49, %v733_v41  ;;  %v483_v55 = vadd.f32 %v482_v50, %v481_v51  ;;  %v664_v56 = vpop.permute.xlu1 %663  ;;  %v660_v57 = vpop.permute.xlu0 %659 }
 0x17b   : > { %v690_v58 = vmul.f32 %v1381_v11, %v664_v56  ;;  %v689_v59 = vmul.f32 %v1379_v10, %v660_v57 }
 0x17c   : > { %v777_v60 = vsel %vm520_vm7, %v730_v52, %v776_v30  ;;  %v479_v61 = vrot.slane %v478_v53, 1  ;;  %v736_v32 = vrot.slane %v735_v54, 2  ;;  %v484_v62 = vrot.slane %v483_v55, 4 }
 0x17d   : > { %v741_v63 = vsel %vm435_vm4, %v690_v58, 0.0  ;;  %v740_v0 = vsel %vm435_vm4, %v689_v59, 0.0 }
 0x17e   : > { %v480_v1 = vadd.f32 %v479_v61, %v478_v53  ;;  %v737_v26 = vadd.f32 %v736_v32, %v735_v54  ;;  %v485_v2 = vadd.f32 %v484_v62, %v483_v55  ;;  %v742_v3 = vadd.f32 %v741_v63, %v740_v0  ;;  %v411_v4 = vpop.permute.xlu1 %410  ;;  %v407_v5 = vpop.permute.xlu0 %406 }
 0x17f   : > { %v432_v6 = vmul.f32 %v1381_v11, %v411_v4  ;;  %v431_v7 = vmul.f32 %v1379_v10, %v407_v5 }
 0x180   : > { %v523_v33 = vsel %vm522_vm8, %v480_v1, %v521_v46  ;;  %v738_v8 = vrot.slane %v737_v26, 1  ;;  %v486_v9 = vrot.slane %v485_v2, 2  ;;  %v743_v12 = vrot.slane %v742_v3, 4 }
 0x181   : > { %v491_v29 = vsel %vm435_vm4, %v432_v6, 0.0  ;;  %v490_v13 = vsel %vm435_vm4, %v431_v7, 0.0 }
 0x182   : > { %v739_v14 = vadd.f32 %v738_v8, %v737_v26  ;;  %v487_v15 = vadd.f32 %v486_v9, %v485_v2  ;;  %v744_v16 = vadd.f32 %v743_v12, %v742_v3  ;;  %v492_v17 = vadd.f32 %v491_v29, %v490_v13  ;;  %v671_v18 = vpop.permute.xlu1 %670  ;;  %v667_v19 = vpop.permute.xlu0 %666 }
 0x183   : > { %v692_v20 = vmul.f32 %v1381_v11, %v671_v18  ;;  %v691_v21 = vmul.f32 %v1379_v10, %v667_v19 }
 0x184   : > { %v778_v22 = vsel %vm522_vm8, %v739_v14, %v777_v60  ;;  %v488_v23 = vrot.slane %v487_v15, 1  ;;  %v745_v24 = vrot.slane %v744_v16, 2  ;;  %v493_v25 = vrot.slane %v492_v17, 4 }
 0x185   : > { %v750_v27 = vsel %vm435_vm4, %v692_v20, 0.0  ;;  %v749_v28 = vsel %vm435_vm4, %v691_v21, 0.0 }
 0x186   : > { %v489_v30 = vadd.f32 %v488_v23, %v487_v15  ;;  %v746_v31 = vadd.f32 %v745_v24, %v744_v16  ;;  %v494_v34 = vadd.f32 %v493_v25, %v492_v17  ;;  %v751_v35 = vadd.f32 %v750_v27, %v749_v28  ;;  %v418_v36 = vpop.permute.xlu1 %417  ;;  %v414_v37 = vpop.permute.xlu0 %413 }
 0x187   : > { %v434_v38 = vmul.f32 %v1381_v11, %v418_v36  ;;  %v433_v39 = vmul.f32 %v1379_v10, %v414_v37 }
 0x188   : > { %v525_v40 = vsel %vm524_vm9, %v489_v30, %v523_v33  ;;  %v747_v41 = vrot.slane %v746_v31, 1  ;;  %v495_v42 = vrot.slane %v494_v34, 2  ;;  %v752_v43 = vrot.slane %v751_v35, 4 }
 0x189   : > { %v500_v44 = vsel %vm435_vm4, %v434_v38, 0.0  ;;  %v499_v45 = vsel %vm435_vm4, %v433_v39, 0.0 }
 0x18a   : > { %v748_v46 = vadd.f32 %v747_v41, %v746_v31  ;;  %v496_v47 = vadd.f32 %v495_v42, %v494_v34  ;;  %v753_v48 = vadd.f32 %v752_v43, %v751_v35  ;;  %v501_v49 = vadd.f32 %v500_v44, %v499_v45  ;;  %v678_v50 = vpop.permute.xlu1 %677  ;;  %v674_v51 = vpop.permute.xlu0 %673 }
 0x18b   : > { %v694_v52 = vmul.f32 %v1381_v11, %v678_v50  ;;  %v693_v53 = vmul.f32 %v1379_v10, %v674_v51 }
 0x18c   : > { %v779_v54 = vsel %vm524_vm9, %v748_v46, %v778_v22  ;;  %v497_v55 = vrot.slane %v496_v47, 1  ;;  %v754_v56 = vrot.slane %v753_v48, 2  ;;  %v502_v57 = vrot.slane %v501_v49, 4 }
 0x18d   : > { %v759_v58 = vsel %vm435_vm4, %v694_v52, 0.0  ;;  %v758_v59 = vsel %vm435_vm4, %v693_v53, 0.0 }
 0x18e   : > { %v498_v60 = vadd.f32 %v497_v55, %v496_v47  ;;  %v755_v61 = vadd.f32 %v754_v56, %v753_v48  ;;  %v503_v32 = vadd.f32 %v502_v57, %v501_v49  ;;  %v760_v62 = vadd.f32 %v759_v58, %v758_v59 }
 0x190   : > { %v527_v63 = vsel %vm526_vm10, %v498_v60, %v525_v40  ;;  %v756_v0 = vrot.slane %v755_v61, 1  ;;  %v504_v11 = vrot.slane %v503_v32, 2  ;;  %v761_v10 = vrot.slane %v760_v62, 4 }
 0x192   : > { %v757_v1 = vadd.f32 %v756_v0, %v755_v61  ;;  %v505_v26 = vadd.f32 %v504_v11, %v503_v32  ;;  %v762_v2 = vadd.f32 %v761_v10, %v760_v62 }
 0x194   : > { %v780_v3 = vsel %vm526_vm10, %v757_v1, %v779_v54  ;;  %v506_v4 = vrot.slane %v505_v26, 1  ;;  %v763_v5 = vrot.slane %v762_v2, 2 }
 0x196   : > { %v507_v6 = vadd.f32 %v506_v4, %v505_v26  ;;  %v764_v7 = vadd.f32 %v763_v5, %v762_v2 }
 0x198   : > { %v529_v33 = vsel %vm528_vm11, %v507_v6, %v527_v63  ;;  %v765_v8 = vrot.slane %v764_v7, 1 }
 0x199   : > { %531 = vst.msk [vmem:[%s1376_s27] sm:$0xff] %vm435_vm4, %v529_v33 }
 0x19a   : > { %v766_v9 = vadd.f32 %v765_v8, %v764_v7 }
 0x19c   : > { %v781_v12 = vsel %vm528_vm11, %v766_v9, %v780_v3 }
 0x19d   : > { %916 = vst.msk [vmem:[%s1376_s27 + $0x8] sm:$0xff] %vm435_vm4, %v781_v12 }
 0x19e PF: > { %p917_p10 = scmp.lt.s32.totalorder %s1169_s12, 2 }
 0x19f   : > { %vm789_vm12 = vcmask (!%p917_p10), 64512   ;;  %v1191_v29 = vmov (!%p917_p10), 0.0  }
 0x1a0   : > { %788 = sbr.rel (%p917_p10) target bundleno = 423 (0x1a7), region = 36  ;;  %790 = vst.msk [vmem:[%s1376_s27] sm:$0xff] (!%p917_p10), %vm789_vm12, %v1191_v29  ;;  %791 = vst.msk [vmem:[%s1376_s27 + $0x8] sm:$0xff] (!%p917_p10), %vm789_vm12, %v1191_v29 }
 0x1a7 PF: > { %s919_s29 = sshll.u32 %s1169_s12, 1  ;;  %s920_s22 = sshll.u32 %s1173_s13, 3 }
 0x1a8   : > { %s808_s21 = sshll.u32 %s1376_s27, 4  ;;  %s805_s28 = sadd.s32 %s920_s22, %s919_s29  ;;  %s1543_s21 = int_to_ptr.vmem [resolvable:$true] %s808_s21 }
 0x1a9   : > { %s921_s30 = sshll.u32 %s805_s28, 7  ;;  %s1552_s20 = scalar_lea.sflag [#allocation4], %s157_s2 }
 0x1aa   : > { %s1548_s25 = scalar_lea.hbm %s1614_s1, %s921_s30  ;;  %s1063_s24 = scalar_lea.vmem %s1543_s21, 256 }
 0x1ab   : > { %p1064_p4 = scmp.ne.s32.totalorder %s1543_s21, %s1063_s24  ;;  %p1625_p5 = scmp.ne.s32.totalorder %s1622_s5, 0 }
 0x1ac   : > { %s1192_s12 = smov [#allocation5]  }
 0x1ad   : > { %p1065_p2 = pnand %p1064_p4, %p1625_p5  ;;  %s1067_s13 = sshll.u32 %s1192_s12, 4  ;;  %s1068_s13 = int_to_ptr.vmem [resolvable:$false] %s1067_s13 }
 0x1ae   : > { %s1069_s26 = scalar_lea.vmem %s1068_s13, 512  ;;  %p1070_p6 = scmp.lt.s32.totalorder %s1543_s21, %s1068_s13 }
 0x1af   : > { %p1066_p3 = pneg %p1065_p2  ;;  %p1071_p8 = scmp.lt.s32.totalorder %s1069_s26, %s1063_s24 }
 0x1b1   : > { %p1072_p11 = por %p1071_p8, %p1070_p6 }
 0x1b3   : > { %p1073_p12 = pnand %p1072_p11, %p1066_p3 }
 0x1b5   : > { %1076 = shalt.err (!%p1073_p12)
}
 0x1b6   : > { %s1077_s17 = scalar_lea.hbm %s1548_s25, 256  ;;  %s1081_s27 = scalar_lea.hbm %s1614_s1, 2048 }
 0x1b7   : > { %p1078_p13 = scmp.ne.s32.totalorder %s1548_s25, %s1077_s17  ;;  %p1082_p0 = scmp.lt.u32.totalorder %s1548_s25, %s1614_s1 }
 0x1b8   : > { %p1083_p1 = scmp.lt.u32.totalorder %s1081_s27, %s1077_s17  ;;  %p1085_p4 = scmp.lt.u32.totalorder %s1077_s17, %s1548_s25 }
 0x1b9   : > { %p1079_p7 = pnand %p1078_p13, %p1625_p5 }
 0x1ba   : > { %p1084_p10 = por %p1083_p1, %p1082_p0 }
 0x1bb   : > { %p1080_p9 = pneg %p1079_p7 }
 0x1bc   : > { %p1086_p2 = por %p1085_p4, %p1084_p10 }
 0x1be   : > { %p1087_p3 = pnand %p1086_p2, %p1080_p9 }
 0x1c0   : > { %1090 = shalt.err (!%p1087_p3)
}
 0x1c1   : > { %s1193_s28 = smov 128   ;;  %s1194_s30 = smov 8  }
 0x1c2   : > { %927 = dma.vmem_to_hbm [thread:$0]  (%p1625_p5), %s1543_s21, 256, %s1548_s25, %s1552_s20, %s1193_s28, %s1193_s28, %s1194_s30  }
 0x1c3 PF: > { %p938_p6 = scmp.ge.s32.totalorder %s1185_s16, 2  ;;  %s823_s18 = sand.u32 1, %s1145_s6  }
 0x1c4   : > { %p1626_p8 = scmp.ne.s32.totalorder %s1623_s9, 0  ;;  %s824_s23 = scalar_lea.sflag [#allocation4], %s823_s18 }
 0x1c6   : > { %p934_p11 = pnand %p938_p6, %p1626_p8 }
 0x1c8   : > { %1140 = dma.done.wait (!%p934_p11), %s824_s23, 256  }
 0x1c9   : > { %1142 = vsyncadd (!%p934_p11), %s824_s23, 4294967040  ;;  %s17_s16 = sadd.s32 1, %s1185_s16   ;;  %s1627_s5 = sld [smem:[#allocation8_spill]] }
 0x1ca   : > { %p14_p12 = scmp.ge.s32.totalorder %s17_s16, 10   ;;  %s1628_s21 = sld [smem:[#allocation9_spill]] }
 0x1cb   : > { %s1629_s6 = smov %s1149_s7  ;;  %s1630_s7 = smov %s1153_s8 }
 0x1cc   : > { %s1631_s8 = smov %s1307_s4  ;;  %s1632_s9 = smov %s1161_s10 }
 0x1cd   : > { %s1633_s10 = smov %s1165_s11  ;;  %s1634_s11 = smov %s1298_s3 }
 0x1ce   : > { %s1635_s12 = smov %s1177_s14  ;;  %s1636_s13 = smov %s1181_s15 }
 0x1cf   : > { %s1637_s14 = smov %s1627_s5  ;;  %16 = sbr.rel (!%p14_p12) target bundleno = 9 (0x9), region = 79 }
 0x1d0   : > { %s1638_s15 = smov %s1628_s21 }
 0x1d6   :  { %829 = vsyncpa [#allocation3], 1 }
 0x1d7   :  { %831 = vsyncpa [#allocation3 + $0x1], 1 }
 0x1d8   :  { %832 = vsyncpa [#allocation4], 1 }
 0x1d9   :  { %834 = vsyncpa [#allocation4 + $0x1], 1 }

</bundles_post_ra>
